<compile_context>
chip_gen: v5e
topology: v5e:2x2
jax: 0.10.0
libtpu: 0.0.40
codegen_flags: <defaults>
</compile_context>

<pallas_src>
import jax
import jax.numpy as jnp
from jax.experimental import pallas as pl
from jax.experimental.pallas import tpu as pltpu


def _round_up(x, m):
    return (x + m - 1) // m * m


def _tpu_kind():
    try:
        d = jax.devices()[0]
        if d.platform != "tpu":
            return ""
        return (d.device_kind or "").lower()
    except Exception:
        return ""


def _make_conv_bn_relu_kernel(b_blk, T_out, K, C_in, C_out):
    M = b_blk * T_out

    def kernel(x_ref, w_ref, scale_ref, shift_ref, o_ref):
        # x_ref:     (b_blk, Tp, C_in)   'same'-padded activations, time-major
        # w_ref:     (K, C_in, C_out)    conv weight, one (C_in, C_out) slab per tap
        # scale_ref: (1, C_out)          fused BN scale = gamma / sqrt(var + eps)
        # shift_ref: (1, C_out)          fused BN shift = (bias - mean) * scale + beta
        # o_ref:     (b_blk, T_out, C_out)
        x = x_ref[...]
        # K accumulated MXU dots (static unroll over small K).  Avoids the
        # lane-axis im2col concat relayout; each tap's slice is only a sublane
        # shift of the resident tile and the flatten is layout-free because
        # T_out is sublane-aligned.
        acc = jnp.dot(x[:, 0:T_out, :].reshape(M, C_in), w_ref[0],
                      preferred_element_type=jnp.float32)
        for k in range(1, K):
            lhs = x[:, k:k + T_out, :].reshape(M, C_in)
            acc = acc + jnp.dot(lhs, w_ref[k],
                                preferred_element_type=jnp.float32)
        y = acc * scale_ref[...] + shift_ref[...]          # fused BatchNorm affine
        y = jnp.maximum(y, 0.0)                            # ReLU
        o_ref[...] = y.reshape(b_blk, T_out, C_out).astype(o_ref.dtype)

    return kernel


def conv_forward(x_nct, weight, bias, gamma, beta, running_mean, running_var,
                 eps=1e-5, compute_dtype=None, out_dtype=None, m_target=2048):
    """Pallas implementation of Conv.forward (eval mode).

    x_nct:  (B, C_in, T)   -- PyTorch NCW layout
    weight: (C_out, C_in, K)
    returns (B, T, C_out)  -- matches module output after permute(0, 2, 1)
    """
    B, C_in, T = x_nct.shape
    C_out, _, K = weight.shape
    pad_l = (K - 1) // 2

    if compute_dtype is None:
        compute_dtype = x_nct.dtype
    if out_dtype is None:
        out_dtype = x_nct.dtype
    in_itemsize = jnp.dtype(compute_dtype).itemsize
    out_itemsize = jnp.dtype(out_dtype).itemsize

    # Sublane alignment for the compute dtype (bf16 packs 16 rows per vreg).
    t_align = 16 if in_itemsize < 4 else 8
    T_al = _round_up(T, t_align)                 # output rows computed per batch elem
    Tp = _round_up(T_al + K - 1, t_align)        # halo'd, aligned input time extent

    # ---- chip-dependent blocking heuristics -------------------------------
    kind = _tpu_kind()
    two_tc = "v7" in kind                        # v7x: 2 TensorCores per chip
    big_vmem = ("v5" in kind) or ("v6" in kind)  # 128 MiB physical VMEM
    vmem_limit = (64 if big_vmem else 32) * 1024 * 1024
    vmem_budget = (40 if big_vmem else 20) * 1024 * 1024

    # ---- batch-block selection: fuse b_blk*T_al rows into the matmul M dim --
    b_blk = max(1, m_target // max(T_al, 1))
    if two_tc and B > 1:
        # Keep >= 2 grid steps only where a second TensorCore exists.
        b_blk = min(b_blk, pl.cdiv(B, 2))
    b_blk = max(1, min(b_blk, B))

    def _vmem_est(bb):  # double-buffered tiles + f32 intermediates (rough)
        x_bytes = bb * Tp * C_in * in_itemsize
        o_bytes = bb * T_al * C_out * out_itemsize
        w_bytes = K * C_in * C_out * in_itemsize
        scratch = bb * T_al * (C_in + 2 * C_out) * 4
        return 2 * (x_bytes + o_bytes + w_bytes) + scratch

    while b_blk > 1 and _vmem_est(b_blk) > vmem_budget:
        b_blk = max(1, b_blk // 2)

    num_blocks = pl.cdiv(B, b_blk)
    if two_tc and num_blocks > 1 and num_blocks % 2 != 0:
        # Even step count so both TensorCores get equal work.
        num_blocks = _round_up(num_blocks, 2)
        b_blk = pl.cdiv(B, num_blocks)
        num_blocks = pl.cdiv(B, b_blk)
    B_pad = num_blocks * b_blk

    # ---- glue (transpose + pad + cast fuse into one XLA op chain) ----------
    x_tc = jnp.transpose(x_nct, (0, 2, 1)).astype(compute_dtype)       # (B, T, C_in)
    x_pad = jnp.pad(x_tc, ((0, B_pad - B), (pad_l, Tp - T - pad_l), (0, 0)))
    # Padded batch / time rows produce finite garbage that is sliced off below.

    # Conv weight as (K, C_in, C_out): one contraction slab per tap.
    w_kio = jnp.transpose(weight, (2, 1, 0)).astype(compute_dtype)

    scale_1d = gamma / jnp.sqrt(running_var + eps)                     # (C_out,)
    shift_1d = (bias - running_mean) * scale_1d + beta                 # (C_out,)
    scale = scale_1d.reshape(1, C_out).astype(jnp.float32)
    shift = shift_1d.reshape(1, C_out).astype(jnp.float32)

    kernel = _make_conv_bn_relu_kernel(b_blk, T_al, K, C_in, C_out)

    # weight/scale/shift have constant index_maps so Pallas does not re-DMA
    # them across grid steps; their double-buffer footprint is tiny.
    out = pl.pallas_call(
        kernel,
        out_shape=jax.ShapeDtypeStruct((B_pad, T_al, C_out), out_dtype),
        grid_spec=pltpu.PrefetchScalarGridSpec(
            num_scalar_prefetch=0,
            grid=(num_blocks,),
            in_specs=[
                pl.BlockSpec((b_blk, Tp, C_in), lambda m: (m, 0, 0)),
                pl.BlockSpec((K, C_in, C_out), lambda m: (0, 0, 0)),
                pl.BlockSpec((1, C_out), lambda m: (0, 0)),
                pl.BlockSpec((1, C_out), lambda m: (0, 0)),
            ],
            out_specs=pl.BlockSpec((b_blk, T_al, C_out), lambda m: (m, 0, 0)),
        ),
        compiler_params=pltpu.CompilerParams(
            dimension_semantics=("parallel",),
            vmem_limit_bytes=vmem_limit,
        ),
    )(x_pad, w_kio, scale, shift)
    return out[:B, :T]


def conv_forward_ref(x_nct, weight, bias, gamma, beta, running_mean,
                     running_var, eps=1e-5):
    """Pure-JAX reference (mirrors PyTorch eval-mode forward)."""
    y = jax.lax.conv_general_dilated(
        x_nct, weight,
        window_strides=(1,),
        padding="SAME",
        dimension_numbers=("NCH", "OIH", "NCH"),
    ) + bias[None, :, None]
    y = (y - running_mean[None, :, None]) / jnp.sqrt(
        running_var[None, :, None] + eps)
    y = gamma[None, :, None] * y + beta[None, :, None]
    y = jnp.maximum(y, 0.0)
    return jnp.transpose(y, (0, 2, 1))


def _make_params(key, C_in, C_out, K):
    k_w, k_b, k_g, k_be, k_m, k_v = jax.random.split(key, 6)
    weight = jax.random.normal(k_w, (C_out, C_in, K), dtype=jnp.float32) * 0.05
    bias = jax.random.normal(k_b, (C_out,), dtype=jnp.float32) * 0.1
    gamma = 1.0 + 0.1 * jax.random.normal(k_g, (C_out,), dtype=jnp.float32)
    beta = 0.1 * jax.random.normal(k_be, (C_out,), dtype=jnp.float32)
    running_mean = 0.1 * jax.random.normal(k_m, (C_out,), dtype=jnp.float32)
    running_var = jnp.abs(1.0 + 0.1 * jax.random.normal(k_v, (C_out,),
                                                        dtype=jnp.float32))
    return weight, bias, gamma, beta, running_mean, running_var


if __name__ == "__main__":
    # Module defaults: Conv(channels=[80, 256], kernels=[3, 3], dropout=0.2)
    C_in, C_out, K, T = 80, 256, 3, 16

    key = jax.random.PRNGKey(0)
    k_p, k_x1, k_x2, k_x3 = jax.random.split(key, 4)
    params = _make_params(k_p, C_in, C_out, K)
    weight = params[0]

    # Test 1: small batch, f32 compute.
    B1 = 2
    x1 = jax.random.normal(k_x1, (B1, C_in, T), dtype=jnp.float32)
    out1 = jax.block_until_ready(conv_forward(x1, *params))
    ref1 = conv_forward_ref(x1, *params)
    assert out1.shape == (B1, T, C_out), out1.shape
    assert jnp.allclose(out1, ref1, rtol=1e-3, atol=1e-3), "mismatch vs reference (B=2)"

    # Test 2: ragged batch exercising batch padding, f32 compute.
    B2 = 5
    x2 = jax.random.normal(k_x2, (B2, C_in, T), dtype=jnp.float32)
    out2 = jax.block_until_ready(conv_forward(x2, *params))
    ref2 = conv_forward_ref(x2, *params)
    assert out2.shape == (B2, T, C_out), out2.shape
    assert jnp.allclose(out2, ref2, rtol=1e-3, atol=1e-3), "mismatch vs reference (B=5)"

    # Test 3: bf16 compute path (f32 accumulation + f32 BN/ReLU + f32 output);
    # compare against a reference fed the same bf16-rounded x/weight.
    B3 = 4
    x3 = jax.random.normal(k_x3, (B3, C_in, T), dtype=jnp.float32)
    out3 = jax.block_until_ready(
        conv_forward(x3, *params, compute_dtype=jnp.bfloat16))
    x3_r = x3.astype(jnp.bfloat16).astype(jnp.float32)
    w_r = weight.astype(jnp.bfloat16).astype(jnp.float32)
    ref3 = conv_forward_ref(x3_r, w_r, *params[1:])
    assert out3.shape == (B3, T, C_out), out3.shape
    assert jnp.allclose(out3, ref3, rtol=5e-3, atol=5e-3), "mismatch vs reference (bf16)"

    print("KERNEL_OK")
</pallas_src>

<mosaic_0001>
module attributes {stable_mosaic.version = 11 : i64} {
  func.func @kernel(%arg0: i32, %arg1: memref<2x24x80xf32, #tpu.memory_space<vmem>>, %arg2: memref<3x80x256xf32, #tpu.memory_space<vmem>>, %arg3: memref<1x256xf32, #tpu.memory_space<vmem>>, %arg4: memref<1x256xf32, #tpu.memory_space<vmem>>, %arg5: memref<2x16x256xf32, #tpu.memory_space<vmem>>) attributes {dimension_semantics = [#tpu.dimension_semantics<parallel>], iteration_bounds = array<i64: 1>, scalar_prefetch = 0 : i64, scratch_operands = 0 : i64, tpu.core_type = #tpu.core_type<tc>, window_params = [{transform_indices = @transform_0, window_bounds = array<i64: 2, 24, 80>}, {pipeline_mode = #tpu.pipeline_mode<synchronous>, transform_indices = @transform_1, window_bounds = array<i64: 3, 80, 256>}, {pipeline_mode = #tpu.pipeline_mode<synchronous>, transform_indices = @transform_2, window_bounds = array<i64: 1, 256>}, {pipeline_mode = #tpu.pipeline_mode<synchronous>, transform_indices = @transform_3, window_bounds = array<i64: 1, 256>}, {transform_indices = @transform_4, window_bounds = array<i64: 2, 16, 256>}]} {
    %c0 = arith.constant 0 : index
    %c0_0 = arith.constant 0 : index
    %c0_1 = arith.constant 0 : index
    %0 = vector.load %arg1[%c0, %c0_0, %c0_1] : memref<2x24x80xf32, #tpu.memory_space<vmem>>, vector<2x24x80xf32>
    %1 = vector.extract_strided_slice %0 {offsets = [0, 0, 0], sizes = [2, 16, 80], strides = [1, 1, 1]} : vector<2x24x80xf32> to vector<2x16x80xf32>
    %2 = vector.shape_cast %1 : vector<2x16x80xf32> to vector<32x80xf32>
    %c0_2 = arith.constant 0 : index
    %c0_3 = arith.constant 0 : index
    %c0_4 = arith.constant 0 : index
    %3 = vector.load %arg2[%c0_2, %c0_3, %c0_4] : memref<3x80x256xf32, #tpu.memory_space<vmem>>, vector<1x80x256xf32>
    %4 = vector.shape_cast %3 : vector<1x80x256xf32> to vector<80x256xf32>
    %cst = arith.constant dense<0.000000e+00> : vector<32x256xf32>
    %5 = tpu.matmul %2, %4, %cst {dimension_numbers = #tpu.dot_dimension_numbers<[1], [0], [0], [1], [0, 0, 1, 1], [], []>} : vector<32x80xf32>, vector<80x256xf32>, vector<32x256xf32> -> vector<32x256xf32>
    %6 = vector.extract_strided_slice %0 {offsets = [0, 1, 0], sizes = [2, 16, 80], strides = [1, 1, 1]} : vector<2x24x80xf32> to vector<2x16x80xf32>
    %7 = vector.shape_cast %6 : vector<2x16x80xf32> to vector<32x80xf32>
    %c1 = arith.constant 1 : index
    %c0_5 = arith.constant 0 : index
    %c0_6 = arith.constant 0 : index
    %8 = vector.load %arg2[%c1, %c0_5, %c0_6] : memref<3x80x256xf32, #tpu.memory_space<vmem>>, vector<1x80x256xf32>
    %9 = vector.shape_cast %8 : vector<1x80x256xf32> to vector<80x256xf32>
    %cst_7 = arith.constant dense<0.000000e+00> : vector<32x256xf32>
    %10 = tpu.matmul %7, %9, %cst_7 {dimension_numbers = #tpu.dot_dimension_numbers<[1], [0], [0], [1], [0, 0, 1, 1], [], []>} : vector<32x80xf32>, vector<80x256xf32>, vector<32x256xf32> -> vector<32x256xf32>
    %11 = arith.addf %5, %10 : vector<32x256xf32>
    %12 = vector.extract_strided_slice %0 {offsets = [0, 2, 0], sizes = [2, 16, 80], strides = [1, 1, 1]} : vector<2x24x80xf32> to vector<2x16x80xf32>
    %13 = vector.shape_cast %12 : vector<2x16x80xf32> to vector<32x80xf32>
    %c2 = arith.constant 2 : index
    %c0_8 = arith.constant 0 : index
    %c0_9 = arith.constant 0 : index
    %14 = vector.load %arg2[%c2, %c0_8, %c0_9] : memref<3x80x256xf32, #tpu.memory_space<vmem>>, vector<1x80x256xf32>
    %15 = vector.shape_cast %14 : vector<1x80x256xf32> to vector<80x256xf32>
    %cst_10 = arith.constant dense<0.000000e+00> : vector<32x256xf32>
    %16 = tpu.matmul %13, %15, %cst_10 {dimension_numbers = #tpu.dot_dimension_numbers<[1], [0], [0], [1], [0, 0, 1, 1], [], []>} : vector<32x80xf32>, vector<80x256xf32>, vector<32x256xf32> -> vector<32x256xf32>
    %17 = arith.addf %11, %16 : vector<32x256xf32>
    %c0_11 = arith.constant 0 : index
    %c0_12 = arith.constant 0 : index
    %18 = vector.load %arg3[%c0_11, %c0_12] : memref<1x256xf32, #tpu.memory_space<vmem>>, vector<1x256xf32>
    %19 = vector.broadcast %18 : vector<1x256xf32> to vector<32x256xf32>
    %20 = arith.mulf %17, %19 : vector<32x256xf32>
    %c0_13 = arith.constant 0 : index
    %c0_14 = arith.constant 0 : index
    %21 = vector.load %arg4[%c0_13, %c0_14] : memref<1x256xf32, #tpu.memory_space<vmem>>, vector<1x256xf32>
    %22 = vector.broadcast %21 : vector<1x256xf32> to vector<32x256xf32>
    %23 = arith.addf %20, %22 : vector<32x256xf32>
    %cst_15 = arith.constant 0.000000e+00 : f32
    %24 = vector.broadcast %cst_15 : f32 to vector<32x256xf32>
    %25 = arith.maximumf %23, %24 : vector<32x256xf32>
    %26 = vector.shape_cast %25 : vector<32x256xf32> to vector<2x16x256xf32>
    %c0_16 = arith.constant 0 : index
    %c0_17 = arith.constant 0 : index
    %c0_18 = arith.constant 0 : index
    %27 = vector.load %arg5[%c0_16, %c0_17, %c0_18] : memref<2x16x256xf32, #tpu.memory_space<vmem>>, vector<2x16x256xf32>
    tpu.vector_store %arg5[%c0_16, %c0_17, %c0_18], %26 {strides = array<i32>} : memref<2x16x256xf32, #tpu.memory_space<vmem>>, vector<2x16x256xf32>,
    return
  }
  func.func @transform_0(%arg0: i32) -> (i32, i32, i32) {
    %c0_i32 = arith.constant 0 : i32
    %c0_i32_0 = arith.constant 0 : i32
    %c0_i32_1 = arith.constant 0 : i32
    return %arg0, %c0_i32, %c0_i32_0 : i32, i32, i32
  }
  func.func @transform_1(%arg0: i32) -> (i32, i32, i32) {
    %c0_i32 = arith.constant 0 : i32
    %c0_i32_0 = arith.constant 0 : i32
    %c0_i32_1 = arith.constant 0 : i32
    %c0_i32_2 = arith.constant 0 : i32
    return %c0_i32, %c0_i32_0, %c0_i32_1 : i32, i32, i32
  }
  func.func @transform_2(%arg0: i32) -> (i32, i32) {
    %c0_i32 = arith.constant 0 : i32
    %c0_i32_0 = arith.constant 0 : i32
    %c0_i32_1 = arith.constant 0 : i32
    return %c0_i32, %c0_i32_0 : i32, i32
  }
  func.func @transform_3(%arg0: i32) -> (i32, i32) {
    %c0_i32 = arith.constant 0 : i32
    %c0_i32_0 = arith.constant 0 : i32
    %c0_i32_1 = arith.constant 0 : i32
    return %c0_i32, %c0_i32_0 : i32, i32
  }
  func.func @transform_4(%arg0: i32) -> (i32, i32, i32) {
    %c0_i32 = arith.constant 0 : i32
    %c0_i32_0 = arith.constant 0 : i32
    %c0_i32_1 = arith.constant 0 : i32
    return %arg0, %c0_i32, %c0_i32_0 : i32, i32, i32
  }
}

</mosaic_0001>

<bundles_post_ra>
// kernel: tpu_custom_call.1
= control target key start
LH: loop header
LB: loop body
LE: loop exit
PB: predicated region body
PF: predicated region fallthrough
CT: control target
= control target key end

     0   :  { %9 = vsyncpa [#allocation3], 0  ;;  %s694_s0 = inlined_call_operand.hbm [shape: f32[2,24,80], index: 0, kind: input, shape index: {}]   ;;  %s695_s1 = inlined_call_operand.hbm [shape: f32[3,80,256], index: 1, kind: input, shape index: {}]   ;;  %s696_s2 = inlined_call_operand.hbm [shape: f32[1,256], index: 2, kind: input, shape index: {}]   ;;  %s697_s3 = inlined_call_operand.vmem [shape: f32[1,256], index: 3, kind: input, shape index: {}]   ;;  %s698_s4 = inlined_call_operand.hbm [shape: f32[2,16,256], index: 4, kind: output, shape index: {}]  }
   0x1   :  { %10 = vsyncpa [#allocation6], 0  ;;  %s29_s17 = sshll.u32 %s695_s1, 4  ;;  %s30_s17 = int_to_ptr.hbm [resolvable:$true] %s29_s17 }
   0x2   :  { %11 = vsyncpa [#allocation4], 0  ;;  %s584_s18 = smov [#allocation5]   ;;  %s16_s22 = sshll.u32 %s694_s0, 4  ;;  %s17_s22 = int_to_ptr.hbm [resolvable:$true] %s16_s22 }
   0x3   :  { %s31_s19 = sshll.u32 %s584_s18, 4  ;;  %s585_s23 = smov 256   ;;  %s32_s19 = int_to_ptr.vmem [resolvable:$true] %s31_s19 }
   0x4   :  { %s586_s24 = smov 16   ;;  %s587_s25 = smov [#allocation2]  }
   0x5   :  { %37 = dma.hbm_to_vmem [thread:$0]  %s30_s17, 7680, %s32_s19, [#allocation6], %s585_s23, %s585_s23, %s586_s24  }
   0x6   :  { %s18_s26 = sshll.u32 %s587_s25, 4  ;;  %s588_s1 = smov 128   ;;  %s19_s26 = int_to_ptr.vmem [resolvable:$true] %s18_s26 }
   0x7   :  { %s589_s27 = smov 8   ;;  %s43_s30 = sshll.u32 %s696_s2, 4  ;;  %s44_s30 = int_to_ptr.hbm [resolvable:$true] %s43_s30 }
   0x8   :  { %24 = dma.hbm_to_vmem [thread:$0]  %s17_s22, 768, %s19_s26, [#allocation3], %s588_s1, %s588_s1, %s589_s27  }
   0x9   :  { %s590_s5 = smov [#allocation7]  }
   0xa   :  { %s45_s0 = sshll.u32 %s590_s5, 4  ;;  %s46_s0 = int_to_ptr.vmem [resolvable:$true] %s45_s0 }
   0xb   :  { %48 = dma.hbm_to_vmem [thread:$0]  %s44_s30, 32, %s46_s0, [#allocation6]  }
   0xc   :  { %578 = dma.done.wait [#allocation3], 768  }
   0xd   :  { %579 = vsyncadd [#allocation3], 4294966528 }
   0xe   :  { %580 = dma.done.wait [#allocation6], 7712  }
   0xf   :  { %581 = vsyncadd [#allocation6], 4294959584  ;;  %v125_v0 = vld [vmem:[#allocation5 + $0x130] sm:$0xff]  ;;  %v126_v1 = vld [vmem:[#allocation5 + $0x138] sm:$0xff]  ;;  %vm95_vm0 = vcmask 1046528   ;;  %vm127_vm1 = vcmask 654336  }
  0x10   :  { %v87_v2 = vld [vmem:[#allocation5 + $0x90] sm:$0xff]  ;;  %142 = vmatpush.msra.mxu0 %v125_v0  ;;  %171 = vmatpush.msra.mxu1 %v126_v1  ;;  %v88_v3 = vld [vmem:[#allocation5 + $0x98] sm:$0xff]  ;;  %v123_v4 = vld [vmem:[#allocation5 + $0x120] sm:$0xff]  ;;  %vm260_vm2 = vcmask 1045504   ;;  %s416_s10 = sshll.u32 %s698_s4, 4  ;;  %s417_s10 = int_to_ptr.hbm [resolvable:$true] %s416_s10 }
  0x11   :  { %v124_v5 = vld [vmem:[#allocation5 + $0x128] sm:$0xff]  ;;  %208 = vmatpush.msra.mxu2 %v87_v2  ;;  %237 = vmatpush.msra.mxu3 %v88_v3  ;;  %v85_v6 = vld [vmem:[#allocation5 + $0x80] sm:$0xff]  ;;  %v121_v8 = vld [vmem:[#allocation5 + $0x110] sm:$0xff] }
  0x12   :  { %v86_v7 = vld [vmem:[#allocation5 + $0x88] sm:$0xff]  ;;  %143 = vmatpush.msra.mxu0 %v123_v4  ;;  %172 = vmatpush.msra.mxu1 %v124_v5  ;;  %v122_v9 = vld [vmem:[#allocation5 + $0x118] sm:$0xff]  ;;  %v83_v10 = vld [vmem:[#allocation5 + $0x70] sm:$0xff] }
  0x13   :  { %v84_v11 = vld [vmem:[#allocation5 + $0x78] sm:$0xff]  ;;  %209 = vmatpush.msra.mxu2 %v85_v6  ;;  %238 = vmatpush.msra.mxu3 %v86_v7  ;;  %v119_v12 = vld [vmem:[#allocation5 + $0x100] sm:$0xff]  ;;  %v120_v13 = vld [vmem:[#allocation5 + $0x108] sm:$0xff] }
  0x14   :  { %144 = vmatpush.msra.mxu0 %v121_v8  ;;  %173 = vmatpush.msra.mxu1 %v122_v9  ;;  %v81_v14 = vld [vmem:[#allocation5 + $0x60] sm:$0xff]  ;;  %v82_v15 = vld [vmem:[#allocation5 + $0x68] sm:$0xff]  ;;  %v117_v16 = vld [vmem:[#allocation5 + $0xf0] sm:$0xff] }
  0x15   :  { %210 = vmatpush.msra.mxu2 %v83_v10  ;;  %239 = vmatpush.msra.mxu3 %v84_v11  ;;  %v118_v17 = vld [vmem:[#allocation5 + $0xf8] sm:$0xff]  ;;  %v79_v18 = vld [vmem:[#allocation5 + $0x50] sm:$0xff]  ;;  %v115_v20 = vld [vmem:[#allocation5 + $0xe0] sm:$0xff] }
  0x16   :  { %145 = vmatpush.msra.mxu0 %v119_v12  ;;  %174 = vmatpush.msra.mxu1 %v120_v13  ;;  %v80_v19 = vld [vmem:[#allocation5 + $0x58] sm:$0xff]  ;;  %v116_v21 = vld [vmem:[#allocation5 + $0xe8] sm:$0xff]  ;;  %v77_v22 = vld [vmem:[#allocation5 + $0x40] sm:$0xff] }
  0x17   :  { %211 = vmatpush.msra.mxu2 %v81_v14  ;;  %240 = vmatpush.msra.mxu3 %v82_v15  ;;  %v78_v23 = vld [vmem:[#allocation5 + $0x48] sm:$0xff]  ;;  %v113_v24 = vld [vmem:[#allocation5 + $0xd0] sm:$0xff]  ;;  %v114_v25 = vld [vmem:[#allocation5 + $0xd8] sm:$0xff] }
  0x18   :  { %146 = vmatpush.msra.mxu0 %v117_v16  ;;  %175 = vmatpush.msra.mxu1 %v118_v17  ;;  %v75_v26 = vld [vmem:[#allocation5 + $0x30] sm:$0xff]  ;;  %v76_v27 = vld [vmem:[#allocation5 + $0x38] sm:$0xff]  ;;  %v111_v28 = vld [vmem:[#allocation5 + $0xc0] sm:$0xff] }
  0x19   :  { %212 = vmatpush.msra.mxu2 %v79_v18  ;;  %241 = vmatpush.msra.mxu3 %v80_v19  ;;  %v112_v29 = vld [vmem:[#allocation5 + $0xc8] sm:$0xff]  ;;  %v73_v30 = vld [vmem:[#allocation5 + $0x20] sm:$0xff]  ;;  %v629_v32 = vld [vmem:[#allocation2] sm:$0xff] }
  0x1a   :  { %147 = vmatpush.msra.mxu0 %v115_v20  ;;  %176 = vmatpush.msra.mxu1 %v116_v21  ;;  %v74_v31 = vld [vmem:[#allocation5 + $0x28] sm:$0xff]  ;;  %v631_v33 = vld [vmem:[#allocation2 + $0x8] sm:$0xff]  ;;  %v109_v34 = vld [vmem:[#allocation5 + $0xb0] sm:$0xff]  ;;  %v96_v36 = vrot.slane %v629_v32, 1  ;;  %v261_v12 = vrot.slane %v629_v32, 2 }
  0x1b   :  { %213 = vmatpush.msra.mxu2 %v77_v22  ;;  %242 = vmatpush.msra.mxu3 %v78_v23  ;;  %v110_v35 = vld [vmem:[#allocation5 + $0xb8] sm:$0xff]  ;;  %v97_v37 = vrot.slane %v631_v33, 1  ;;  %v71_v38 = vld [vmem:[#allocation5 + $0x10] sm:$0xff]  ;;  %v107_v40 = vld [vmem:[#allocation5 + $0xa0] sm:$0xff]  ;;  %v262_v13 = vrot.slane %v631_v33, 2 }
  0x1c   :  { %148 = vmatpush.msra.mxu0 %v113_v24  ;;  %177 = vmatpush.msra.mxu1 %v114_v25  ;;  %v72_v39 = vld [vmem:[#allocation5 + $0x18] sm:$0xff]  ;;  %v108_v41 = vld [vmem:[#allocation5 + $0xa8] sm:$0xff]  ;;  %v69_v42 = vld [vmem:[#allocation5] sm:$0xff] }
  0x1d   :  { %214 = vmatpush.msra.mxu2 %v75_v26  ;;  %243 = vmatpush.msra.mxu3 %v76_v27  ;;  %v70_v43 = vld [vmem:[#allocation5 + $0x8] sm:$0xff]  ;;  %v98_v44 = vsel %vm95_vm0, %v96_v36, %v97_v37  ;;  %v636_v45 = vld [vmem:[#allocation2 + $0x10] sm:$0xff]  ;;  %v290_v46 = vld [vmem:[#allocation5 + $0x1d0] sm:$0xff]  ;;  %v263_v16 = vsel %vm260_vm2, %v261_v12, %v262_v13 }
  0x1e   :  { %149 = vmatpush.msra.mxu0 %v111_v28  ;;  %178 = vmatpush.msra.mxu1 %v112_v29  ;;  %v291_v47 = vld [vmem:[#allocation5 + $0x1d8] sm:$0xff]  ;;  %v288_v48 = vld [vmem:[#allocation5 + $0x1c0] sm:$0xff]  ;;  %v289_v49 = vld [vmem:[#allocation5 + $0x1c8] sm:$0xff]  ;;  %v99_v50 = vrot.slane %v636_v45, 1  ;;  %v264_v18 = vrot.slane %v636_v45, 2 }
  0x1f   :  { %215 = vmatpush.msra.mxu2 %v73_v30  ;;  %244 = vmatpush.msra.mxu3 %v74_v31  ;;  %v286_v51 = vld [vmem:[#allocation5 + $0x1b0] sm:$0xff]  ;;  %v287_v52 = vld [vmem:[#allocation5 + $0x1b8] sm:$0xff]  ;;  %v646_v54 = vld [vmem:[#allocation2 + $0x18] sm:$0xff] }
  0x20   :  { %150 = vmatpush.msra.mxu0 %v109_v34  ;;  %179 = vmatpush.msra.mxu1 %v110_v35  ;;  %v100_v53 = vsel %vm95_vm0, %v97_v37, %v99_v50  ;;  %v648_v55 = vld [vmem:[#allocation2 + $0x20] sm:$0xff]  ;;  %v284_v56 = vld [vmem:[#allocation5 + $0x1a0] sm:$0xff]  ;;  %v285_v57 = vld [vmem:[#allocation5 + $0x1a8] sm:$0xff]  ;;  %v101_v60 = vrot.slane %v646_v54, 1  ;;  %v266_v14 = vrot.slane %v646_v54, 2  ;;  %v265_v20 = vsel %vm260_vm2, %v262_v13, %v264_v18 }
  0x21   :  { %216 = vmatpush.msra.mxu2 %v71_v38  ;;  %245 = vmatpush.msra.mxu3 %v72_v39  ;;  %v282_v58 = vld [vmem:[#allocation5 + $0x190] sm:$0xff]  ;;  %v283_v59 = vld [vmem:[#allocation5 + $0x198] sm:$0xff]  ;;  %v102_v61 = vrot.slane %v648_v55, 1  ;;  %v280_v62 = vld [vmem:[#allocation5 + $0x180] sm:$0xff]  ;;  %v267_v15 = vrot.slane %v648_v55, 2 }
  0x22   :  { %151 = vmatpush.msra.mxu0 %v107_v40  ;;  %180 = vmatpush.msra.mxu1 %v108_v41  ;;  %v281_v63 = vld [vmem:[#allocation5 + $0x188] sm:$0xff]  ;;  %v68_v1 = vld [vmem:[#allocation2 + $0x28] sm:$0xff]  ;;  %v278_v2 = vld [vmem:[#allocation5 + $0x170] sm:$0xff] }
  0x23   :  { %217 = vmatpush.msra.mxu2 %v69_v42  ;;  %246 = vmatpush.msra.mxu3 %v70_v43  ;;  %v103_v0 = vsel %vm95_vm0, %v101_v60, %v102_v61  ;;  %v279_v3 = vld [vmem:[#allocation5 + $0x178] sm:$0xff]  ;;  %v276_v4 = vld [vmem:[#allocation5 + $0x160] sm:$0xff]  ;;  %v277_v5 = vld [vmem:[#allocation5 + $0x168] sm:$0xff]  ;;  %v104_v6 = vrot.slane %v68_v1, 1  ;;  %v268_v17 = vsel %vm260_vm2, %v266_v14, %v267_v15  ;;  %v269_v19 = vrot.slane %v68_v1, 2 }
  0x24   :  { %430 = vmatmul.msk.f32.vlgmr.msra.gmra.mxu0 %vm127_vm1, %v98_v44  ;;  %434 = vmatmul.msk.f32.vlgmr.msra.gmra.mxu1 %vm127_vm1, %v98_v44  ;;  %v274_v7 = vld [vmem:[#allocation5 + $0x150] sm:$0xff]  ;;  %v275_v8 = vld [vmem:[#allocation5 + $0x158] sm:$0xff]  ;;  %v272_v10 = vld [vmem:[#allocation5 + $0x140] sm:$0xff] }
  0x25   :  { %438 = vmatmul.msk.f32.vlgmr.msra.gmra.mxu2 %vm127_vm1, %v629_v32  ;;  %442 = vmatmul.msk.f32.vlgmr.msra.gmra.mxu3 %vm127_vm1, %v629_v32  ;;  %v105_v9 = vsel %vm95_vm0, %v102_v61, %v104_v6  ;;  %v273_v11 = vld [vmem:[#allocation5 + $0x148] sm:$0xff]  ;;  %v270_v21 = vsel %vm260_vm2, %v267_v15, %v269_v19  ;;  %v366_v36 = vld [vmem:[#allocation7] sm:$0x3]  ;;  %v380_v37 = vld [vmem:[%s697_s3] sm:$0x3]  ;;  %s591_s3 = smov [#allocation8]  }
  0x26   :  { %454 = vmatpush.msrb.mxu2 %v290_v46  ;;  %464 = vmatpush.msrb.mxu3 %v291_v47  ;;  %v368_v42 = vperm.slane %v366_v36, 0  ;;  %v369_v43 = vperm.slane %v366_v36, 1  ;;  %s414_s7 = sshll.u32 %s591_s3, 4  ;;  %s415_s7 = int_to_ptr.vmem [resolvable:$true] %s414_s7 }
  0x27   :  { %306 = vmatpush.msrb.mxu0 %v290_v46  ;;  %335 = vmatpush.msrb.mxu1 %v291_v47  ;;  %v382_v47 = vperm.slane %v380_v37, 0 }
  0x28   :  { %455 = vmatpush.msrb.mxu2 %v288_v48  ;;  %465 = vmatpush.msrb.mxu3 %v289_v49 }
  0x29   :  { %307 = vmatpush.msrb.mxu0 %v288_v48  ;;  %336 = vmatpush.msrb.mxu1 %v289_v49  ;;  %v383_v49 = vperm.slane %v380_v37, 1 }
  0x2a   :  { %456 = vmatpush.msrb.mxu2 %v286_v51  ;;  %466 = vmatpush.msrb.mxu3 %v287_v52 }
  0x2b   :  { %308 = vmatpush.msrb.mxu0 %v286_v51  ;;  %337 = vmatpush.msrb.mxu1 %v287_v52 }
  0x2c   :  { %431 = vmatmul.msk.f32.gmra.mxu0 %vm127_vm1, %v100_v53  ;;  %435 = vmatmul.msk.f32.gmra.mxu1 %vm127_vm1, %v100_v53 }
  0x2d   :  { %439 = vmatmul.msk.f32.gmra.mxu2 %vm127_vm1, %v631_v33  ;;  %443 = vmatmul.msk.f32.gmra.mxu3 %vm127_vm1, %v631_v33 }
  0x2e   :  { %457 = vmatpush.msrb.mxu2 %v284_v56  ;;  %467 = vmatpush.msrb.mxu3 %v285_v57 }
  0x2f   :  { %309 = vmatpush.msrb.mxu0 %v284_v56  ;;  %338 = vmatpush.msrb.mxu1 %v285_v57 }
  0x30   :  { %458 = vmatpush.msrb.mxu2 %v282_v58  ;;  %468 = vmatpush.msrb.mxu3 %v283_v59 }
  0x31   :  { %310 = vmatpush.msrb.mxu0 %v282_v58  ;;  %339 = vmatpush.msrb.mxu1 %v283_v59 }
  0x32   :  { %459 = vmatpush.msrb.mxu2 %v280_v62  ;;  %469 = vmatpush.msrb.mxu3 %v281_v63 }
  0x33   :  { %311 = vmatpush.msrb.mxu0 %v280_v62  ;;  %340 = vmatpush.msrb.mxu1 %v281_v63 }
  0x34   :  { %432 = vmatmul.msk.f32.gmra.mxu0 %vm127_vm1, %v103_v0  ;;  %436 = vmatmul.msk.f32.gmra.mxu1 %vm127_vm1, %v103_v0 }
  0x35   :  { %440 = vmatmul.msk.f32.gmra.mxu2 %vm127_vm1, %v646_v54  ;;  %444 = vmatmul.msk.f32.gmra.mxu3 %vm127_vm1, %v646_v54 }
  0x36   :  { %460 = vmatpush.msrb.mxu2 %v278_v2  ;;  %470 = vmatpush.msrb.mxu3 %v279_v3 }
  0x37   :  { %312 = vmatpush.msrb.mxu0 %v278_v2  ;;  %341 = vmatpush.msrb.mxu1 %v279_v3 }
  0x38   :  { %461 = vmatpush.msrb.mxu2 %v276_v4  ;;  %471 = vmatpush.msrb.mxu3 %v277_v5 }
  0x39   :  { %313 = vmatpush.msrb.mxu0 %v276_v4  ;;  %342 = vmatpush.msrb.mxu1 %v277_v5 }
  0x3a   :  { %462 = vmatpush.msrb.mxu2 %v274_v7  ;;  %472 = vmatpush.msrb.mxu3 %v275_v8 }
  0x3b   :  { %314 = vmatpush.msrb.mxu0 %v274_v7  ;;  %343 = vmatpush.msrb.mxu1 %v275_v8 }
  0x3c   :  { %433 = vmatmul.msk.f32.gmra.mxu0 %vm127_vm1, %v105_v9  ;;  %437 = vmatmul.msk.f32.gmra.mxu1 %vm127_vm1, %v105_v9 }
  0x3d   :  { %441 = vmatmul.msk.f32.gmra.mxu2 %vm127_vm1, %v648_v55  ;;  %445 = vmatmul.msk.f32.gmra.mxu3 %vm127_vm1, %v648_v55 }
  0x3e   :  { %463 = vmatpush.msrb.mxu2 %v272_v10  ;;  %473 = vmatpush.msrb.mxu3 %v273_v11 }
  0x3f   :  { %315 = vmatpush.msrb.mxu0 %v272_v10  ;;  %344 = vmatpush.msrb.mxu1 %v273_v11 }
  0x44   :  { %446 = vmatmul.msk.f32.vlgmr.msrb.gmra.mxu0 %vm127_vm1, %v263_v16  ;;  %450 = vmatmul.msk.f32.vlgmr.msrb.gmra.mxu1 %vm127_vm1, %v263_v16 }
  0x45   :  { %448 = vmatmul.msk.f32.vlgmr.msrb.gmra.mxu2 %vm127_vm1, %v268_v17  ;;  %452 = vmatmul.msk.f32.vlgmr.msrb.gmra.mxu3 %vm127_vm1, %v268_v17 }
  0x4c   :  { %447 = vmatmul.msk.f32.gmra.mxu0 %vm127_vm1, %v265_v20  ;;  %451 = vmatmul.msk.f32.gmra.mxu1 %vm127_vm1, %v265_v20 }
  0x4d   :  { %449 = vmatmul.msk.f32.gmra.mxu2 %vm127_vm1, %v270_v21  ;;  %453 = vmatmul.msk.f32.gmra.mxu3 %vm127_vm1, %v270_v21 }
  0xa1   :  { %v153_v22 = vpop.f32.mrf.mxu0  ;;  %v182_v23 = vpop.f32.mrf.mxu1 }
  0xa8   :  { %v219_v24 = vpop.f32.mrf.mxu2  ;;  %v248_v25 = vpop.f32.mrf.mxu3 }
  0xa9   :  { %v156_v26 = vpop.f32.mrf.mxu0  ;;  %v185_v27 = vpop.f32.mrf.mxu1  ;;  %v220_v38 = vadd.f32 %v219_v24, %v153_v22  ;;  %v249_v39 = vadd.f32 %v248_v25, %v182_v23 }
  0xb0   :  { %v222_v28 = vpop.f32.mrf.mxu2  ;;  %v251_v29 = vpop.f32.mrf.mxu3 }
  0xb1   :  { %v159_v30 = vpop.f32.mrf.mxu0  ;;  %v188_v31 = vpop.f32.mrf.mxu1  ;;  %v223_v56 = vadd.f32 %v222_v28, %v156_v26  ;;  %v252_v57 = vadd.f32 %v251_v29, %v185_v27 }
  0xb8   :  { %v225_v32 = vpop.f32.mrf.mxu2  ;;  %v254_v33 = vpop.f32.mrf.mxu3 }
  0xb9   :  { %v162_v34 = vpop.f32.mrf.mxu0  ;;  %v191_v35 = vpop.f32.mrf.mxu1  ;;  %v226_v54 = vadd.f32 %v225_v32, %v159_v30  ;;  %v255_v55 = vadd.f32 %v254_v33, %v188_v31 }
  0xc0   :  { %v228_v40 = vpop.f32.mrf.mxu2  ;;  %v257_v41 = vpop.f32.mrf.mxu3 }
  0xc1   :  { %v317_v44 = vpop.f32.mrf.mxu0  ;;  %v346_v45 = vpop.f32.mrf.mxu1  ;;  %v229_v12 = vadd.f32 %v228_v40, %v162_v34  ;;  %v258_v13 = vadd.f32 %v257_v41, %v191_v35 }
  0xc2   :  { %v358_v46 = vadd.f32 %v317_v44, %v220_v38  ;;  %v359_v48 = vadd.f32 %v346_v45, %v249_v39 }
  0xc4   :  { %v372_v50 = vmul.f32 %v368_v42, %v358_v46  ;;  %v373_v51 = vmul.f32 %v369_v43, %v359_v48 }
  0xc6   :  { %v386_v52 = vadd.f32 %v382_v47, %v372_v50  ;;  %v387_v53 = vadd.f32 %v383_v49, %v373_v51 }
  0xc8   :  { %v394_v58 = vmax.f32 %v386_v52, 0.0  ;;  %v395_v59 = vmax.f32 %v387_v53, 0.0  ;;  %v323_v60 = vpop.f32.mrf.mxu2  ;;  %v352_v61 = vpop.f32.mrf.mxu3 }
  0xc9   :  { %v362_v62 = vadd.f32 %v323_v60, %v226_v54  ;;  %v363_v63 = vadd.f32 %v352_v61, %v255_v55  ;;  %v320_v0 = vpop.f32.mrf.mxu0  ;;  %v349_v1 = vpop.f32.mrf.mxu1 }
  0xca   :  { %402 = vst [vmem:[#allocation8] sm:$0xff] %v394_v58  ;;  %v360_v2 = vadd.f32 %v320_v0, %v223_v56  ;;  %v361_v3 = vadd.f32 %v349_v1, %v252_v57 }
  0xcb   :  { %403 = vst [vmem:[#allocation8 + $0x8] sm:$0xff] %v395_v59  ;;  %v376_v4 = vmul.f32 %v368_v42, %v362_v62  ;;  %v377_v5 = vmul.f32 %v369_v43, %v363_v63 }
  0xcc   :  { %v374_v6 = vmul.f32 %v368_v42, %v360_v2  ;;  %v375_v7 = vmul.f32 %v369_v43, %v361_v3 }
  0xcd   :  { %v390_v8 = vadd.f32 %v382_v47, %v376_v4  ;;  %v391_v9 = vadd.f32 %v383_v49, %v377_v5 }
  0xce   :  { %v388_v10 = vadd.f32 %v382_v47, %v374_v6  ;;  %v389_v11 = vadd.f32 %v383_v49, %v375_v7 }
  0xcf   :  { %v398_v14 = vmax.f32 %v390_v8, 0.0  ;;  %v399_v15 = vmax.f32 %v391_v9, 0.0 }
  0xd0   :  { %v396_v16 = vmax.f32 %v388_v10, 0.0  ;;  %v397_v17 = vmax.f32 %v389_v11, 0.0  ;;  %v326_v18 = vpop.f32.mrf.mxu2  ;;  %v355_v19 = vpop.f32.mrf.mxu3 }
  0xd1   :  { %406 = vst [vmem:[#allocation8 + $0x20] sm:$0xff] %v398_v14  ;;  %v364_v20 = vadd.f32 %v326_v18, %v229_v12  ;;  %v365_v21 = vadd.f32 %v355_v19, %v258_v13 }
  0xd2   :  { %407 = vst [vmem:[#allocation8 + $0x28] sm:$0xff] %v399_v15 }
  0xd3   :  { %404 = vst [vmem:[#allocation8 + $0x10] sm:$0xff] %v396_v16  ;;  %v378_v22 = vmul.f32 %v368_v42, %v364_v20  ;;  %v379_v23 = vmul.f32 %v369_v43, %v365_v21 }
  0xd4   :  { %405 = vst [vmem:[#allocation8 + $0x18] sm:$0xff] %v397_v17 }
  0xd5   :  { %v392_v24 = vadd.f32 %v382_v47, %v378_v22  ;;  %v393_v25 = vadd.f32 %v383_v49, %v379_v23 }
  0xd7   :  { %v400_v26 = vmax.f32 %v392_v24, 0.0  ;;  %v401_v27 = vmax.f32 %v393_v25, 0.0 }
  0xd9   :  { %408 = vst [vmem:[#allocation8 + $0x30] sm:$0xff] %v400_v26 }
  0xda   :  { %409 = vst [vmem:[#allocation8 + $0x38] sm:$0xff] %v401_v27 }
  0xdb   :  { %422 = dma.vmem_to_hbm [thread:$0]  %s415_s7, 1024, %s417_s10, [#allocation4], %s585_s23, %s585_s23, %s586_s24  }
  0xdc   :  { %582 = dma.done.wait [#allocation4], 1024  }
  0xdd   :  { %583 = vsyncadd [#allocation4], 4294966272 }
  0xde   :  { %427 = vsyncpa [#allocation3], 1 }
  0xdf   :  { %428 = vsyncpa [#allocation6], 1 }
  0xe0   :  { %429 = vsyncpa [#allocation4], 1 }

</bundles_post_ra>
